<compile_context>
chip_gen: v7x
topology: tpu7x:2x2x1
jax: 0.10.0
libtpu: 0.0.40
codegen_flags: <defaults>
</compile_context>

<pallas_src>
import functools

import jax
import jax.numpy as jnp
from jax.experimental import pallas as pl
from jax.experimental.pallas import tpu as pltpu


# ---------------------------------------------------------------------------
# Kernel
# ---------------------------------------------------------------------------
def inverse_net_kernel(y_ref, w1_ref, b1_ref, w2_ref, b2_ref, w3_ref, b3_ref,
                       out_ref):
    y = y_ref[...]                                            # (TILE_N, 1) f32

    # Layer 1: Linear(1, 64) == broadcast multiply (K=1 matmul wastes the MXU).
    h1 = jnp.tanh(y * w1_ref[...] + b1_ref[...])              # (TILE_N, 64) f32

    # Layer 2: Linear(64, 64) -- bf16 MXU operands, f32 accumulate, f32 tanh.
    h2 = jnp.dot(h1.astype(jnp.bfloat16), w2_ref[...],
                 preferred_element_type=jnp.float32)
    h2 = jnp.tanh(h2 + b2_ref[...])                           # (TILE_N, 64) f32

    # Layer 3: Linear(64, 3) -- bf16 MXU operands, f32 accumulate.
    h3 = jnp.dot(h2.astype(jnp.bfloat16), w3_ref[...],
                 preferred_element_type=jnp.float32)
    out_ref[...] = (h3 + b3_ref[...]).astype(out_ref.dtype)   # (TILE_N, 3)


# ---------------------------------------------------------------------------
# Wrapper
# ---------------------------------------------------------------------------
def _round_up(x, m):
    return ((x + m - 1) // m) * m


@functools.partial(jax.jit, static_argnames=("tile_n",))
def inverse_net_forward(y, params, *, tile_n=512):
    """y: (N, 1) float32 -> (N, 3) float32."""
    w1, b1, w2, b2, w3, b3 = params
    n = y.shape[0]

    # Tile size: multiple of 8, ideally 512+ rows; clamp for tiny batches.
    tile = max(8, min(tile_n, _round_up(n, 8)))
    n_pad = _round_up(n, tile)
    if n_pad != n:
        y = jnp.pad(y, ((0, n_pad - n), (0, 0)))
    grid = (n_pad // tile,)

    const_spec = lambda arr: pl.BlockSpec(arr.shape, lambda i: (0, 0))

    flops = 2 * n_pad * (64 + 64 * 64 + 64 * 3)
    transcendentals = 2 * 64 * n_pad
    weight_bytes = sum(int(a.size) * a.dtype.itemsize
                       for a in (w1, b1, w2, b2, w3, b3))
    bytes_accessed = 4 * n_pad * (1 + 3) + weight_bytes

    out = pl.pallas_call(
        inverse_net_kernel,
        out_shape=jax.ShapeDtypeStruct((n_pad, 3), jnp.float32),
        grid=grid,
        in_specs=[
            pl.BlockSpec((tile, 1), lambda i: (i, 0)),   # y  (batch-tiled)
            const_spec(w1), const_spec(b1),              # (1, 64), (1, 64)
            const_spec(w2), const_spec(b2),              # (64, 64) bf16, (1, 64)
            const_spec(w3), const_spec(b3),              # (64, 3)  bf16, (1, 3)
        ],
        out_specs=pl.BlockSpec((tile, 3), lambda i: (i, 0)),
        compiler_params=pltpu.CompilerParams(
            dimension_semantics=("parallel",),
            vmem_limit_bytes=32 * 1024 * 1024,
        ),
        cost_estimate=pl.CostEstimate(
            flops=flops,
            transcendentals=transcendentals,
            bytes_accessed=bytes_accessed,
        ),
    )(y, w1, b1, w2, b2, w3, b3)

    return out[:n]


# ---------------------------------------------------------------------------
# Params / reference
# ---------------------------------------------------------------------------
def init_params(key):
    """Mirrors PyTorch nn.Linear default init (uniform(+/- 1/sqrt(fan_in))).
    Weights stored [in_features, out_features]; biases as (1, out) rows.
    w2/w3 are kept in bf16 (MXU operand dtype); everything else f32."""
    def linear(key, fan_in, fan_out):
        kw, kb = jax.random.split(key)
        bound = 1.0 / jnp.sqrt(float(fan_in))
        w = jax.random.uniform(kw, (fan_in, fan_out), jnp.float32,
                               minval=-bound, maxval=bound)
        b = jax.random.uniform(kb, (1, fan_out), jnp.float32,
                               minval=-bound, maxval=bound)
        return w, b

    k1, k2, k3 = jax.random.split(key, 3)
    w1, b1 = linear(k1, 1, 64)
    w2, b2 = linear(k2, 64, 64)
    w3, b3 = linear(k3, 64, 3)
    return (w1, b1, w2.astype(jnp.bfloat16), b2, w3.astype(jnp.bfloat16), b3)


def reference_forward(y, params):
    """Plain-JAX reference with the same precision policy (bf16 operands,
    f32 accumulate) as the kernel."""
    w1, b1, w2, b2, w3, b3 = params
    h1 = jnp.tanh(y * w1 + b1)
    h2 = jnp.tanh(jnp.dot(h1.astype(jnp.bfloat16), w2,
                          preferred_element_type=jnp.float32) + b2)
    return jnp.dot(h2.astype(jnp.bfloat16), w3,
                   preferred_element_type=jnp.float32) + b3


# ---------------------------------------------------------------------------
# Test
# ---------------------------------------------------------------------------
if __name__ == "__main__":
    key = jax.random.PRNGKey(0)
    kp, ky1, ky2 = jax.random.split(key, 3)

    params = init_params(kp)

    # Small "spend" column (matches the original module's scalar-target input).
    y_small = jax.random.normal(ky1, (8, 1), dtype=jnp.float32)
    out_small = jax.block_until_ready(inverse_net_forward(y_small, params))
    ref_small = reference_forward(y_small, params)
    assert out_small.shape == (8, 3), out_small.shape
    assert jnp.allclose(out_small, ref_small, atol=1e-4, rtol=1e-4), \
        "mismatch vs reference (small batch)"

    # Ragged multi-tile batch: exercises the grid + tail padding path.
    y_large = jax.random.normal(ky2, (777, 1), dtype=jnp.float32)
    out_large = jax.block_until_ready(
        inverse_net_forward(y_large, params, tile_n=512))
    ref_large = reference_forward(y_large, params)
    assert out_large.shape == (777, 3), out_large.shape
    assert jnp.allclose(out_large, ref_large, atol=1e-4, rtol=1e-4), \
        "mismatch vs reference (tiled batch)"

    print("KERNEL_OK")
</pallas_src>

<mosaic_0001>
module attributes {stable_mosaic.version = 11 : i64} {
  func.func @inverse_net_kernel(%arg0: i32, %arg1: memref<8x1xf32, #tpu.memory_space<vmem>>, %arg2: memref<1x64xf32, #tpu.memory_space<vmem>>, %arg3: memref<1x64xf32, #tpu.memory_space<vmem>>, %arg4: memref<64x64xbf16, #tpu.memory_space<vmem>>, %arg5: memref<1x64xf32, #tpu.memory_space<vmem>>, %arg6: memref<64x3xbf16, #tpu.memory_space<vmem>>, %arg7: memref<1x3xf32, #tpu.memory_space<vmem>>, %arg8: memref<8x3xf32, #tpu.memory_space<vmem>>) attributes {dimension_semantics = [#tpu.dimension_semantics<parallel>], iteration_bounds = array<i64: 1>, scalar_prefetch = 0 : i64, scratch_operands = 0 : i64, tpu.core_type = #tpu.core_type<tc>, window_params = [{transform_indices = @transform_0, window_bounds = array<i64: 8, 1>}, {pipeline_mode = #tpu.pipeline_mode<synchronous>, transform_indices = @transform_1, window_bounds = array<i64: 1, 64>}, {pipeline_mode = #tpu.pipeline_mode<synchronous>, transform_indices = @transform_2, window_bounds = array<i64: 1, 64>}, {pipeline_mode = #tpu.pipeline_mode<synchronous>, transform_indices = @transform_3, window_bounds = array<i64: 64, 64>}, {pipeline_mode = #tpu.pipeline_mode<synchronous>, transform_indices = @transform_4, window_bounds = array<i64: 1, 64>}, {pipeline_mode = #tpu.pipeline_mode<synchronous>, transform_indices = @transform_5, window_bounds = array<i64: 64, 3>}, {pipeline_mode = #tpu.pipeline_mode<synchronous>, transform_indices = @transform_6, window_bounds = array<i64: 1, 3>}, {transform_indices = @transform_7, window_bounds = array<i64: 8, 3>}]} {
    %c0 = arith.constant 0 : index
    %c0_0 = arith.constant 0 : index
    %0 = vector.load %arg1[%c0, %c0_0] : memref<8x1xf32, #tpu.memory_space<vmem>>, vector<8x1xf32>
    %c0_1 = arith.constant 0 : index
    %c0_2 = arith.constant 0 : index
    %1 = vector.load %arg2[%c0_1, %c0_2] : memref<1x64xf32, #tpu.memory_space<vmem>>, vector<1x64xf32>
    %2 = vector.broadcast %0 : vector<8x1xf32> to vector<8x64xf32>
    %3 = vector.broadcast %1 : vector<1x64xf32> to vector<8x64xf32>
    %4 = arith.mulf %2, %3 : vector<8x64xf32>
    %c0_3 = arith.constant 0 : index
    %c0_4 = arith.constant 0 : index
    %5 = vector.load %arg3[%c0_3, %c0_4] : memref<1x64xf32, #tpu.memory_space<vmem>>, vector<1x64xf32>
    %6 = vector.broadcast %5 : vector<1x64xf32> to vector<8x64xf32>
    %7 = arith.addf %4, %6 : vector<8x64xf32>
    %8 = math.tanh %7 : vector<8x64xf32>
    %9 = arith.truncf %8 : vector<8x64xf32> to vector<8x64xbf16>
    %c0_5 = arith.constant 0 : index
    %c0_6 = arith.constant 0 : index
    %10 = vector.load %arg4[%c0_5, %c0_6] : memref<64x64xbf16, #tpu.memory_space<vmem>>, vector<64x64xbf16>
    %cst = arith.constant dense<0.000000e+00> : vector<8x64xf32>
    %11 = tpu.matmul %9, %10, %cst {dimension_numbers = #tpu.dot_dimension_numbers<[1], [0], [0], [1], [0, 0, 1, 1], [], []>} : vector<8x64xbf16>, vector<64x64xbf16>, vector<8x64xf32> -> vector<8x64xf32>
    %c0_7 = arith.constant 0 : index
    %c0_8 = arith.constant 0 : index
    %12 = vector.load %arg5[%c0_7, %c0_8] : memref<1x64xf32, #tpu.memory_space<vmem>>, vector<1x64xf32>
    %13 = vector.broadcast %12 : vector<1x64xf32> to vector<8x64xf32>
    %14 = arith.addf %11, %13 : vector<8x64xf32>
    %15 = math.tanh %14 : vector<8x64xf32>
    %16 = arith.truncf %15 : vector<8x64xf32> to vector<8x64xbf16>
    %c0_9 = arith.constant 0 : index
    %c0_10 = arith.constant 0 : index
    %17 = vector.load %arg6[%c0_9, %c0_10] : memref<64x3xbf16, #tpu.memory_space<vmem>>, vector<64x3xbf16>
    %cst_11 = arith.constant dense<0.000000e+00> : vector<8x3xf32>
    %18 = tpu.matmul %16, %17, %cst_11 {dimension_numbers = #tpu.dot_dimension_numbers<[1], [0], [0], [1], [0, 0, 1, 1], [], []>} : vector<8x64xbf16>, vector<64x3xbf16>, vector<8x3xf32> -> vector<8x3xf32>
    %c0_12 = arith.constant 0 : index
    %c0_13 = arith.constant 0 : index
    %19 = vector.load %arg7[%c0_12, %c0_13] : memref<1x3xf32, #tpu.memory_space<vmem>>, vector<1x3xf32>
    %20 = vector.broadcast %19 : vector<1x3xf32> to vector<8x3xf32>
    %21 = arith.addf %18, %20 : vector<8x3xf32>
    %c0_14 = arith.constant 0 : index
    %c0_15 = arith.constant 0 : index
    %22 = vector.load %arg8[%c0_14, %c0_15] : memref<8x3xf32, #tpu.memory_space<vmem>>, vector<8x3xf32>
    tpu.vector_store %arg8[%c0_14, %c0_15], %21 {strides = array<i32>} : memref<8x3xf32, #tpu.memory_space<vmem>>, vector<8x3xf32>,
    return
  }
  func.func @transform_0(%arg0: i32) -> (i32, i32) {
    %c0_i32 = arith.constant 0 : i32
    %c0_i32_0 = arith.constant 0 : i32
    return %arg0, %c0_i32 : i32, i32
  }
  func.func @transform_1(%arg0: i32) -> (i32, i32) {
    %c0_i32 = arith.constant 0 : i32
    %c0_i32_0 = arith.constant 0 : i32
    %c0_i32_1 = arith.constant 0 : i32
    return %c0_i32, %c0_i32_0 : i32, i32
  }
  func.func @transform_2(%arg0: i32) -> (i32, i32) {
    %c0_i32 = arith.constant 0 : i32
    %c0_i32_0 = arith.constant 0 : i32
    %c0_i32_1 = arith.constant 0 : i32
    return %c0_i32, %c0_i32_0 : i32, i32
  }
  func.func @transform_3(%arg0: i32) -> (i32, i32) {
    %c0_i32 = arith.constant 0 : i32
    %c0_i32_0 = arith.constant 0 : i32
    %c0_i32_1 = arith.constant 0 : i32
    return %c0_i32, %c0_i32_0 : i32, i32
  }
  func.func @transform_4(%arg0: i32) -> (i32, i32) {
    %c0_i32 = arith.constant 0 : i32
    %c0_i32_0 = arith.constant 0 : i32
    %c0_i32_1 = arith.constant 0 : i32
    return %c0_i32, %c0_i32_0 : i32, i32
  }
  func.func @transform_5(%arg0: i32) -> (i32, i32) {
    %c0_i32 = arith.constant 0 : i32
    %c0_i32_0 = arith.constant 0 : i32
    %c0_i32_1 = arith.constant 0 : i32
    return %c0_i32, %c0_i32_0 : i32, i32
  }
  func.func @transform_6(%arg0: i32) -> (i32, i32) {
    %c0_i32 = arith.constant 0 : i32
    %c0_i32_0 = arith.constant 0 : i32
    %c0_i32_1 = arith.constant 0 : i32
    return %c0_i32, %c0_i32_0 : i32, i32
  }
  func.func @transform_7(%arg0: i32) -> (i32, i32) {
    %c0_i32 = arith.constant 0 : i32
    %c0_i32_0 = arith.constant 0 : i32
    return %arg0, %c0_i32 : i32, i32
  }
}

</mosaic_0001>

<bundles_post_ra>
// kernel: inverse_net_forward.1
= control target key start
LH: loop header
LB: loop body
LE: loop exit
PB: predicated region body
PF: predicated region fallthrough
CT: control target
= control target key end

     0   :  { %v288_v0 = vmov 0   ;;  %v289_v3 = vmov 0.0   ;;  %vm290_vm0 = vmmov 0   ;;  %vm90_vm1 = vcmask 523264   ;;  %s375_s0 = inlined_call_operand.vmem [shape: f32[8,1], index: 0, kind: input, shape index: {}]   ;;  %s376_s3 = inlined_call_operand.vmem [shape: bf16[64,64], index: 3, kind: input, shape index: {}]   ;;  %s377_s1 = inlined_call_operand.vmem [shape: f32[1,64], index: 1, kind: input, shape index: {}]   ;;  %s378_s2 = inlined_call_operand.vmem [shape: f32[1,64], index: 2, kind: input, shape index: {}]   ;;  %s379_s5 = inlined_call_operand.vmem [shape: bf16[64,3], index: 5, kind: input, shape index: {}]   ;;  %s380_s4 = inlined_call_operand.vmem [shape: f32[1,64], index: 4, kind: input, shape index: {}]   ;;  %s381_s6 = inlined_call_operand.vmem [shape: f32[1,3], index: 6, kind: input, shape index: {}]   ;;  %s382_s7 = inlined_call_operand.vmem [shape: f32[8,3], index: 7, kind: output, shape index: {}]  }
   0x1   :  { %275 = vset.pattern.permute.xlu0 %v288_v0  ;;  %v27_v1 = vld [vmem:[%s375_s0] sm:$0xff]  ;;  %248 = vmatprep.subr.bf16.mxu0 %v289_v3  ;;  %v277_v4 = vld [vmem:[%s376_s3 + $0x8] sm:$0xff]   ;;  %v278_v5 = vld [vmem:[%s376_s3 + $0x10] sm:$0xff]   ;;  %vm218_vm2 = vcmask 23552  }
   0x2   :  { %31 = vperm.xlu0 %275, %v27_v1   ;;  %v276_v2 = vld [vmem:[%s376_s3] sm:$0xff]   ;;  %260 = vmatprep.subr.bf16.mxu1 %v289_v3  ;;  %v279_v6 = vld [vmem:[%s376_s3 + $0x18] sm:$0xff]   ;;  %v281_v15 = vld [vmem:[%s379_s5 + $0x8] sm:$0xff]  }
   0x3   :  { %249 = vmatpush3.bf16.msra.mxu0 %v276_v2  ;;  %256 = vmatprep.mubr.msk.bf16.mxu0 %vm290_vm0, %v289_v3  ;;  %v224_v7 = vld [vmem:[%s377_s1] ss:$0 sm:$0xff]  ;;  %v282_v16 = vld [vmem:[%s379_s5 + $0x10] sm:$0xff]   ;;  %v283_v17 = vld [vmem:[%s379_s5 + $0x18] sm:$0xff]  }
   0x4   :  { %250 = vmatprep.subr.bf16.mxu0 %v289_v3  ;;  %268 = vmatprep.mubr.msk.bf16.mxu1 %vm290_vm0, %v289_v3  ;;  %v225_v8 = vld [vmem:[%s378_s2] ss:$0 sm:$0xff] }
   0x5   :  { %v280_v14 = vld [vmem:[%s379_s5] sm:$0xff]  }
   0x6   :  { %261 = vmatpush3.bf16.msra.mxu1 %v280_v14  ;;  %v226_v18 = vld [vmem:[%s380_s4] ss:$0 sm:$0xff] }
   0x7   :  { %251 = vmatpush3.bf16.msra.mxu0 %v277_v4  ;;  %262 = vmatprep.subr.bf16.mxu1 %v289_v3  ;;  %v232_v26 = vld [vmem:[%s381_s6] ss:$0 sm:$0xff] }
   0x8   :  { %252 = vmatprep.subr.bf16.mxu0 %v289_v3 }
   0xa   :  { %263 = vmatpush3.bf16.msra.mxu1 %v281_v15 }
   0xb   :  { %253 = vmatpush3.bf16.msra.mxu0 %v278_v5  ;;  %264 = vmatprep.subr.bf16.mxu1 %v289_v3 }
   0xc   :  { %254 = vmatprep.subr.bf16.mxu0 %v289_v3 }
   0xe   :  { %265 = vmatpush3.bf16.msra.mxu1 %v282_v16 }
   0xf   :  { %255 = vmatpush3.bf16.msra.mxu0 %v279_v6  ;;  %266 = vmatprep.subr.bf16.mxu1 %v289_v3 }
  0x12   :  { %267 = vmatpush3.bf16.msra.mxu1 %v283_v17 }
  0x81   :  { %v32_v9 = vpop.permute.xlu0 %31 }
  0x82   :  { %v40_v10 = vmul.f32 %v224_v7, %v32_v9 }
  0x84   :  { %v48_v11 = vadd.f32 %v225_v8, %v40_v10 }
  0x86   :  { %284 = vtanh.f32 %v48_v11 }
  0x90   :  { %v285_v12 = vpop.eup %284 }
  0x91   :  { %v50_v13 = vpack.c.bf16 %v285_v12, %v285_v12 }
  0x93   :  { %257 = vmatmul.mubr.msk.bf16.vlgmr.msra.gmra.mrb[0].mxu0 %vm90_vm1, %v50_v13 }
 0x166   :  { %v128_v19 = vpop.f32.mrb[0].mxu0 }
 0x167   :  { %v129_v20 = vadd.f32 %v226_v18, %v128_v19  ;;  %v258_v21 = vpop.f32.mrb[1].mxu0 }
 0x168   :  { %v131_v22 = vpop.f32.mrb[2].mxu0 }
 0x169   :  { %286 = vtanh.f32 %v129_v20  ;;  %v259_v23 = vpop.f32.mrb[3].mxu0 }
 0x173   :  { %v287_v24 = vpop.eup %286 }
 0x174   :  { %v135_v25 = vpack.c.bf16 %v287_v24, %v287_v24 }
 0x176   :  { %269 = vmatmul.mubr.msk.bf16.vlgmr.msra.gmra.mrb[0].mxu1 %vm90_vm1, %v135_v25 }
 0x249   :  { %v212_v27 = vpop.f32.mrb[0].mxu1 }
 0x24a   :  { %v213_v28 = vadd.f32 %v232_v26, %v212_v27  ;;  %v270_v29 = vpop.f32.mrb[1].mxu1 }
 0x24b   :  { %v215_v30 = vpop.f32.mrb[2].mxu1 }
 0x24c   :  { %219 = vst.msk [vmem:[%s382_s7] sm:$0xff] %vm218_vm2, %v213_v28  ;;  %v271_v31 = vpop.f32.mrb[3].mxu1 }

</bundles_post_ra>
